<compile_context>
chip_gen: v5e
topology: v5e:2x2
jax: 0.10.0
libtpu: 0.0.40
codegen_flags: <defaults>
</compile_context>

<pallas_src>
import jax
import jax.numpy as jnp
from jax.experimental import pallas as pl
from jax.experimental.pallas import tpu as pltpu


# ----------------------------- init-time prep -----------------------------

def make_rope_caches(dim, max_seq_len=1024, dtype=jnp.float32):
    """Matches the PyTorch __init__ exactly (fp32 caches of shape (L, dim))."""
    inv_freq = 1.0 / (10000.0 ** (jnp.arange(0, dim, 2, dtype=jnp.float32) / dim))
    t = jnp.arange(max_seq_len, dtype=jnp.float32)[:, None]          # (L, 1)
    freqs = t @ inv_freq[None, :]                                    # (L, dim/2)
    freqs = jnp.concatenate([freqs, freqs], axis=-1)                 # (L, dim)
    return jnp.cos(freqs).astype(dtype), jnp.sin(freqs).astype(dtype)


def _round_up(x, m):
    return ((x + m - 1) // m) * m


def prepare_rope_caches(cos_cached, sin_cached, num_heads, cache_dtype=jnp.float32):
    """One-time (init) prep, like the module's registered buffers:
    fold the rotate_half sign into sin, tile across heads to (L, H*D), and pad
    the flattened feature dim to a multiple of 128 lanes.
    # TODO(synk): for B==1 decode, keep caches at (L, D) and broadcast across
    # heads in-kernel (VMEM scratch gated on batch==0) to cut cache HBM reads by Hx.
    """
    L, D = cos_cached.shape
    assert D % 2 == 0, "head_dim must be even for rotate_half"
    half = D // 2
    HD = num_heads * D
    HDp = _round_up(HD, 128)

    sign = jnp.concatenate([-jnp.ones((half,), jnp.float32),
                            jnp.ones((D - half,), jnp.float32)])
    cos_t = jnp.tile(cos_cached.astype(jnp.float32), (1, num_heads))            # (L, H*D)
    sin_t = jnp.tile(sin_cached.astype(jnp.float32) * sign[None, :], (1, num_heads))
    if HDp != HD:
        pad = ((0, 0), (0, HDp - HD))
        cos_t = jnp.pad(cos_t, pad)
        sin_t = jnp.pad(sin_t, pad)
    return cos_t.astype(cache_dtype), sin_t.astype(cache_dtype)


# ------------------------------- the kernel --------------------------------

def _make_rope_kernel(D):
    half = D // 2

    def rope_kernel(cos_ref, sin_ref, q_ref, k_ref, qo_ref, ko_ref):
        # cos_ref/sin_ref: (tile_s, HDp) cache dtype; sin carries the rotate_half
        # sign.  q_ref/k_ref/qo_ref/ko_ref: (1, tile_s, HDp) in the I/O dtype.
        cos = cos_ref[...].astype(jnp.float32)
        sin = sin_ref[...].astype(jnp.float32)
        hdp = cos.shape[-1]

        # Hoisted once per grid step and reused for q AND k (JAX does not CSE
        # broadcast/iota): lanes in the first half of their head take the
        # "pull-from-right" roll, lanes in the second half the "pull-from-left".
        lane = jax.lax.broadcasted_iota(jnp.int32, cos.shape, 1)
        first_half = (lane % D) < half

        def apply(x_ref, o_ref):
            x = x_ref[0]                                   # raw dtype, (tile_s, HDp)
            # Unsigned per-head half swap (the sign lives in `sin`), built from
            # two full-width rolls on the raw dtype (jnp.roll semantics):
            #   rot[j] = x[j + half] if (j % D) <  half  -> roll by HDp - half
            #   rot[j] = x[j - half] if (j % D) >= half  -> roll by half
            rot = jnp.where(first_half,
                            pltpu.roll(x, hdp - half, axis=1),
                            pltpu.roll(x, half, axis=1))
            o_ref[0] = (x.astype(jnp.float32) * cos
                        + rot.astype(jnp.float32) * sin).astype(o_ref.dtype)

        apply(q_ref, qo_ref)
        apply(k_ref, ko_ref)

    return rope_kernel


# ------------------------------ tiling policy ------------------------------

def _vmem_budget_bytes():
    """Per-generation pipelined-VMEM budget: ~96 MiB on 128-MiB-VMEM chips
    (v5e/v6e), ~48 MiB on 64-MiB-VMEM chips (v7x).  Conservative fallback."""
    cap = 64 << 20
    try:
        info = pltpu.get_tpu_info()
        cap = int(getattr(info, "vmem_capacity_bytes", cap) or cap)
    except Exception:
        pass
    return (96 << 20) if cap >= (100 << 20) else (48 << 20)


def _pick_seq_tile(S, HDp, qk_itemsize, cache_itemsize, budget_bytes, min_seq_tiles=1):
    """Rows per seq tile: as large as the VMEM budget allows, rounded to the
    dtype's sublane packing, optionally capped so the seq axis has at least
    `min_seq_tiles` grid steps (both v7x TensorCores busy when B == 1)."""
    sub = 8 * max(1, 4 // max(1, qk_itemsize))      # 8 (f32), 16 (bf16), 32 (int8/fp8)
    # Double-buffered VMEM bytes per tile row: 4 q/k blocks (q,k in+out) + 2 cache
    # blocks, plus generous slack for elementwise intermediates (rolls/mask/f32).
    per_row = HDp * (8 * qk_itemsize + 4 * cache_itemsize + 24)
    tile = max(sub, (budget_bytes // per_row) // sub * sub)
    if min_seq_tiles > 1:
        tile = min(tile, max(sub, _round_up(pl.cdiv(S, min_seq_tiles), sub)))
    if tile >= S:
        return S          # a block equal to the full array dim is always legal
    return tile


# ------------------------------ forward wrapper ----------------------------

def rotary_embedding_forward(q, k, cos_t, sin_t, *, donate_inputs=False):
    """q, k: [B, S, H, D]; cos_t/sin_t: prepared caches from prepare_rope_caches
    of shape (max_seq_len, HDp) with HDp = round_up(H*D, 128)."""
    B, S, H, D = q.shape
    assert k.shape == q.shape
    assert D % 2 == 0, "head_dim must be even for rotate_half"
    HD = H * D
    L, HDp = cos_t.shape
    assert sin_t.shape == (L, HDp)
    assert S <= L, "sequence length exceeds cached max_seq_len"
    assert HDp % 128 == 0 and HDp >= HD, "caches not prepared for this (H, D)"

    # ---- wrapper glue: layout only (no per-element hot-path math) ----
    q2 = q.reshape(B, S, HD)
    k2 = k.reshape(B, S, HD)
    if HDp != HD:
        q2 = jnp.pad(q2, ((0, 0), (0, 0), (0, HDp - HD)))
        k2 = jnp.pad(k2, ((0, 0), (0, 0), (0, HDp - HD)))

    budget = _vmem_budget_bytes()
    min_seq_tiles = 2 if B == 1 else 1
    tile_s = _pick_seq_tile(S, HDp, q.dtype.itemsize, cos_t.dtype.itemsize,
                            budget, min_seq_tiles)

    # batch innermost -> cos/sin block index unchanged across batch (DMA skipped).
    grid = (pl.cdiv(S, tile_s), B)

    qk_spec = pl.BlockSpec((1, tile_s, HDp), lambda s, b: (b, s, 0))
    cs_spec = pl.BlockSpec((tile_s, HDp), lambda s, b: (s, 0))

    qo, ko = pl.pallas_call(
        _make_rope_kernel(D),
        out_shape=(
            jax.ShapeDtypeStruct((B, S, HDp), q.dtype),
            jax.ShapeDtypeStruct((B, S, HDp), k.dtype),
        ),
        grid_spec=pltpu.PrefetchScalarGridSpec(
            num_scalar_prefetch=0,
            grid=grid,
            in_specs=[cs_spec, cs_spec, qk_spec, qk_spec],
            out_specs=[qk_spec, qk_spec],
        ),
        compiler_params=pltpu.CompilerParams(
            dimension_semantics=("parallel", "parallel"),
            vmem_limit_bytes=budget,
        ),
        input_output_aliases=({2: 0, 3: 1} if donate_inputs else {}),
    )(cos_t, sin_t, q2, k2)

    if HDp != HD:
        qo = qo[..., :HD]
        ko = ko[..., :HD]
    return qo.reshape(B, S, H, D), ko.reshape(B, S, H, D)


# ---------------- reference (mirrors the PyTorch module) ----------------

def _rotate_half(x):
    half = x.shape[-1] // 2
    return jnp.concatenate([-x[..., half:], x[..., :half]], axis=-1)


def _reference(q, k, cos_cached, sin_cached):
    S = q.shape[1]
    cos = cos_cached[:S, :][None, :, None, :]
    sin = sin_cached[:S, :][None, :, None, :]
    q_emb = q * cos + _rotate_half(q) * sin
    k_emb = k * cos + _rotate_half(k) * sin
    return q_emb, k_emb


if __name__ == "__main__":
    # --- case 1: module-like small shapes, fp32 ---
    B, S, H, D = 2, 8, 4, 32
    max_seq_len = 16
    key = jax.random.PRNGKey(0)
    kq, kk = jax.random.split(key)
    q = jax.random.normal(kq, (B, S, H, D), dtype=jnp.float32)
    k = jax.random.normal(kk, (B, S, H, D), dtype=jnp.float32)
    cos_cached, sin_cached = make_rope_caches(D, max_seq_len)
    cos_t, sin_t = prepare_rope_caches(cos_cached, sin_cached, H)

    q_emb, k_emb = rotary_embedding_forward(q, k, cos_t, sin_t)
    q_emb, k_emb = jax.block_until_ready((q_emb, k_emb))
    q_ref, k_ref = _reference(q, k, cos_cached, sin_cached)
    assert jnp.allclose(q_emb, q_ref, atol=1e-5, rtol=1e-5)
    assert jnp.allclose(k_emb, k_ref, atol=1e-5, rtol=1e-5)

    # --- case 2: B=1 (seq axis split into >= 2 tiles), ragged last tile, fp32 ---
    B2, S2, H2, D2 = 1, 40, 2, 64
    kq2, kk2 = jax.random.split(jax.random.PRNGKey(1))
    q2 = jax.random.normal(kq2, (B2, S2, H2, D2), dtype=jnp.float32)
    k2 = jax.random.normal(kk2, (B2, S2, H2, D2), dtype=jnp.float32)
    cos2, sin2 = make_rope_caches(D2, 64)
    cos2_t, sin2_t = prepare_rope_caches(cos2, sin2, H2)
    q2_emb, k2_emb = jax.block_until_ready(
        rotary_embedding_forward(q2, k2, cos2_t, sin2_t))
    q2_ref, k2_ref = _reference(q2, k2, cos2, sin2)
    assert jnp.allclose(q2_emb, q2_ref, atol=1e-5, rtol=1e-5)
    assert jnp.allclose(k2_emb, k2_ref, atol=1e-5, rtol=1e-5)

    # --- case 3: bf16 I/O (f32 math inside the kernel) ---
    q3 = q.astype(jnp.bfloat16)
    k3 = k.astype(jnp.bfloat16)
    q3_emb, k3_emb = jax.block_until_ready(
        rotary_embedding_forward(q3, k3, cos_t, sin_t))
    q3_ref, k3_ref = _reference(q3, k3, cos_cached, sin_cached)
    assert jnp.allclose(q3_emb.astype(jnp.float32), q3_ref, atol=2e-2, rtol=2e-2)
    assert jnp.allclose(k3_emb.astype(jnp.float32), k3_ref, atol=2e-2, rtol=2e-2)

    print("KERNEL_OK")
</pallas_src>

<mosaic_0001>
module attributes {stable_mosaic.version = 11 : i64} {
  func.func @rope_kernel(%arg0: i32, %arg1: i32, %arg2: memref<8x128xf32, #tpu.memory_space<vmem>>, %arg3: memref<8x128xf32, #tpu.memory_space<vmem>>, %arg4: memref<1x8x128xf32, #tpu.memory_space<vmem>>, %arg5: memref<1x8x128xf32, #tpu.memory_space<vmem>>, %arg6: memref<1x8x128xf32, #tpu.memory_space<vmem>>, %arg7: memref<1x8x128xf32, #tpu.memory_space<vmem>>) attributes {dimension_semantics = [#tpu.dimension_semantics<parallel>, #tpu.dimension_semantics<parallel>], iteration_bounds = array<i64: 1, 2>, scalar_prefetch = 0 : i64, scratch_operands = 0 : i64, tpu.core_type = #tpu.core_type<tc>, window_params = [{transform_indices = @transform_0, window_bounds = array<i64: 8, 128>}, {transform_indices = @transform_1, window_bounds = array<i64: 8, 128>}, {transform_indices = @transform_2, window_bounds = array<i64: 1, 8, 128>}, {transform_indices = @transform_3, window_bounds = array<i64: 1, 8, 128>}, {transform_indices = @transform_4, window_bounds = array<i64: 1, 8, 128>}, {transform_indices = @transform_5, window_bounds = array<i64: 1, 8, 128>}]} {
    %c0 = arith.constant 0 : index
    %c0_0 = arith.constant 0 : index
    %0 = vector.load %arg2[%c0, %c0_0] : memref<8x128xf32, #tpu.memory_space<vmem>>, vector<8x128xf32>
    %c0_1 = arith.constant 0 : index
    %c0_2 = arith.constant 0 : index
    %1 = vector.load %arg3[%c0_1, %c0_2] : memref<8x128xf32, #tpu.memory_space<vmem>>, vector<8x128xf32>
    %2 = tpu.iota {dimensions = array<i32: 1>} : vector<8x128xi32>
    %c32_i32 = arith.constant 32 : i32
    %c0_i32 = arith.constant 0 : i32
    %3 = arith.cmpi eq, %c32_i32, %c0_i32 : i32
    %c1_i32 = arith.constant 1 : i32
    %4 = arith.select %3, %c1_i32, %c32_i32 : i32
    %5 = vector.broadcast %4 : i32 to vector<8x128xi32>
    %6 = arith.remsi %2, %5 : vector<8x128xi32>
    %c0_i32_3 = arith.constant 0 : i32
    %7 = vector.broadcast %c0_i32_3 : i32 to vector<8x128xi32>
    %8 = arith.cmpi ne, %6, %7 : vector<8x128xi32>
    %c0_i32_4 = arith.constant 0 : i32
    %9 = vector.broadcast %c0_i32_4 : i32 to vector<8x128xi32>
    %10 = arith.cmpi slt, %6, %9 : vector<8x128xi32>
    %c0_i32_5 = arith.constant 0 : i32
    %11 = arith.cmpi slt, %4, %c0_i32_5 : i32
    %12 = vector.broadcast %11 : i1 to vector<8x128xi1>
    %13 = vector.broadcast %12 : vector<8x128xi1> to vector<8x128xi1>
    %14 = arith.xori %10, %13 : vector<8x128xi1>
    %15 = arith.andi %14, %8 : vector<8x128xi1>
    %16 = vector.broadcast %4 : i32 to vector<8x128xi32>
    %17 = arith.addi %6, %16 : vector<8x128xi32>
    %18 = arith.select %15, %17, %6 : vector<8x128xi1>, vector<8x128xi32>
    %c16_i32 = arith.constant 16 : i32
    %19 = vector.broadcast %c16_i32 : i32 to vector<8x128xi32>
    %20 = arith.cmpi slt, %18, %19 : vector<8x128xi32>
    %c0_6 = arith.constant 0 : index
    %c0_7 = arith.constant 0 : index
    %c0_8 = arith.constant 0 : index
    %21 = vector.load %arg4[%c0_6, %c0_7, %c0_8] : memref<1x8x128xf32, #tpu.memory_space<vmem>>, vector<1x8x128xf32>
    %22 = vector.shape_cast %21 : vector<1x8x128xf32> to vector<8x128xf32>
    %c112_i32 = arith.constant 112 : i32
    %23 = tpu.dynamic_rotate %22 by %c112_i32 dim 1 : vector<8x128xf32>, i32 -> vector<8x128xf32>
    %c16_i32_9 = arith.constant 16 : i32
    %24 = tpu.dynamic_rotate %22 by %c16_i32_9 dim 1 : vector<8x128xf32>, i32 -> vector<8x128xf32>
    %25 = arith.select %20, %23, %24 : vector<8x128xi1>, vector<8x128xf32>
    %26 = arith.mulf %22, %0 : vector<8x128xf32>
    %27 = arith.mulf %25, %1 : vector<8x128xf32>
    %28 = arith.addf %26, %27 : vector<8x128xf32>
    %c0_10 = arith.constant 0 : index
    %c0_11 = arith.constant 0 : index
    %c0_12 = arith.constant 0 : index
    %29 = vector.load %arg6[%c0_10, %c0_11, %c0_12] : memref<1x8x128xf32, #tpu.memory_space<vmem>>, vector<1x8x128xf32>
    %30 = vector.shape_cast %29 : vector<1x8x128xf32> to vector<8x128xf32>
    %31 = vector.shape_cast %28 : vector<8x128xf32> to vector<1x8x128xf32>
    tpu.vector_store %arg6[%c0_10, %c0_11, %c0_12], %31 {strides = array<i32>} : memref<1x8x128xf32, #tpu.memory_space<vmem>>, vector<1x8x128xf32>,
    %c0_13 = arith.constant 0 : index
    %c0_14 = arith.constant 0 : index
    %c0_15 = arith.constant 0 : index
    %32 = vector.load %arg5[%c0_13, %c0_14, %c0_15] : memref<1x8x128xf32, #tpu.memory_space<vmem>>, vector<1x8x128xf32>
    %33 = vector.shape_cast %32 : vector<1x8x128xf32> to vector<8x128xf32>
    %c112_i32_16 = arith.constant 112 : i32
    %34 = tpu.dynamic_rotate %33 by %c112_i32_16 dim 1 : vector<8x128xf32>, i32 -> vector<8x128xf32>
    %c16_i32_17 = arith.constant 16 : i32
    %35 = tpu.dynamic_rotate %33 by %c16_i32_17 dim 1 : vector<8x128xf32>, i32 -> vector<8x128xf32>
    %36 = arith.select %20, %34, %35 : vector<8x128xi1>, vector<8x128xf32>
    %37 = arith.mulf %33, %0 : vector<8x128xf32>
    %38 = arith.mulf %36, %1 : vector<8x128xf32>
    %39 = arith.addf %37, %38 : vector<8x128xf32>
    %c0_18 = arith.constant 0 : index
    %c0_19 = arith.constant 0 : index
    %c0_20 = arith.constant 0 : index
    %40 = vector.load %arg7[%c0_18, %c0_19, %c0_20] : memref<1x8x128xf32, #tpu.memory_space<vmem>>, vector<1x8x128xf32>
    %41 = vector.shape_cast %40 : vector<1x8x128xf32> to vector<8x128xf32>
    %42 = vector.shape_cast %39 : vector<8x128xf32> to vector<1x8x128xf32>
    tpu.vector_store %arg7[%c0_18, %c0_19, %c0_20], %42 {strides = array<i32>} : memref<1x8x128xf32, #tpu.memory_space<vmem>>, vector<1x8x128xf32>,
    return
  }
  func.func @transform_0(%arg0: i32, %arg1: i32) -> (i32, i32) {
    %c0_i32 = arith.constant 0 : i32
    %c0_i32_0 = arith.constant 0 : i32
    return %arg0, %c0_i32 : i32, i32
  }
  func.func @transform_1(%arg0: i32, %arg1: i32) -> (i32, i32) {
    %c0_i32 = arith.constant 0 : i32
    %c0_i32_0 = arith.constant 0 : i32
    return %arg0, %c0_i32 : i32, i32
  }
  func.func @transform_2(%arg0: i32, %arg1: i32) -> (i32, i32, i32) {
    %c0_i32 = arith.constant 0 : i32
    %c0_i32_0 = arith.constant 0 : i32
    return %arg1, %arg0, %c0_i32 : i32, i32, i32
  }
  func.func @transform_3(%arg0: i32, %arg1: i32) -> (i32, i32, i32) {
    %c0_i32 = arith.constant 0 : i32
    %c0_i32_0 = arith.constant 0 : i32
    return %arg1, %arg0, %c0_i32 : i32, i32, i32
  }
  func.func @transform_4(%arg0: i32, %arg1: i32) -> (i32, i32, i32) {
    %c0_i32 = arith.constant 0 : i32
    %c0_i32_0 = arith.constant 0 : i32
    return %arg1, %arg0, %c0_i32 : i32, i32, i32
  }
  func.func @transform_5(%arg0: i32, %arg1: i32) -> (i32, i32, i32) {
    %c0_i32 = arith.constant 0 : i32
    %c0_i32_0 = arith.constant 0 : i32
    return %arg1, %arg0, %c0_i32 : i32, i32, i32
  }
}

</mosaic_0001>

<bundles_post_ra>
// kernel: tpu_custom_call.1
= control target key start
LH: loop header
LB: loop body
LE: loop exit
PB: predicated region body
PF: predicated region fallthrough
CT: control target
= control target key end

     0   :  { %s1186_s0 = inlined_call_operand.hbm [shape: f32[16,128], index: 0, kind: input, shape index: {}]   ;;  %s1187_s1 = inlined_call_operand.hbm [shape: f32[16,128], index: 1, kind: input, shape index: {}]   ;;  %s1188_s2 = inlined_call_operand.hbm [shape: f32[2,8,128], index: 2, kind: input, shape index: {}]   ;;  %s1189_s3 = inlined_call_operand.hbm [shape: f32[2,8,128], index: 3, kind: input, shape index: {}]   ;;  %s1190_s4 = inlined_call_operand.hbm [shape: f32[2,8,128], index: 4, kind: output, shape index: {0}]   ;;  %s1191_s5 = inlined_call_operand.hbm [shape: f32[2,8,128], index: 5, kind: output, shape index: {1}]  }
   0x1   :  { %1196 = sst [smem:[#allocation22_spill]] %s1186_s0 }
   0x2   :  { %1197 = sst [smem:[#allocation23_spill]] %s1188_s2 }
   0x3   :  { %11 = vsyncpa [#allocation3], 0 }
   0x4   :  { %12 = vsyncpa [#allocation6], 0 }
   0x5   :  { %13 = vsyncpa [#allocation4], 0 }
   0x6   :  { %15 = vsyncpa [#allocation4 + $0x1], 0 }
   0x7   :  { %16 = vsyncpa [#allocation11], 0 }
   0x8   :  { %18 = vsyncpa [#allocation11 + $0x1], 0  ;;  %s980_s18 = smov 0   ;;  %s982_s19 = smov 0  }
   0x9   :  { %s984_s20 = smov 0   ;;  %s986_s21 = smov 0  }
   0xa   :  { %s988_s22 = smov 0   ;;  %s990_s23 = smov 0  }
   0xb LB: > { %1198 = sst [smem:[#allocation17_spill]] %s932_s20  ;;  %s1011_s24 = sadd.s32 4294967295, %s944_s23   ;;  %s944_s23 = sphi %s990_s23, %s24_s23   ;;  %s940_s22 = sphi %s988_s22, %s1216_s22   ;;  %s936_s21 = sphi %s986_s21, %s1215_s21   ;;  %s932_s20 = sphi %s984_s20, %s1214_s20   ;;  %s928_s19 = sphi %s982_s19, %s1218_s19   ;;  %s924_s18 = sphi %s980_s18, %s1217_s18  }
   0xc   : > { %1199 = sst [smem:[#allocation18_spill]] %s940_s22  ;;  %s585_s25 = sadd.s32 4294967294, %s944_s23  }
   0xd   : > { %p110_p0 = scmp.ne.s32.totalorder %s928_s19, %s924_s18  ;;  %p111_p1 = scmp.eq.s32.totalorder %s1011_s24, 0 }
   0xe   : > { %p164_p2 = scmp.eq.s32.totalorder %s1011_s24, 1  ;;  %p170_p3 = scmp.eq.s32.totalorder %s585_s25, 1 }
   0xf   : > { %p1020_p4 = por %p111_p1, %p110_p0  ;;  %p586_p5 = scmp.ge.s32.totalorder %s944_s23, 1 }
  0x10   : > { %p1025_p6 = por %p170_p3, %p110_p0  ;;  %p205_p7 = scmp.lt.s32.totalorder %s944_s23, 3 }
  0x11   : > { %s1203_s0 = sld [smem:[#allocation22_spill]]  ;;  %p589_p9 = scmp.ge.s32.totalorder %s944_s23, 2 }
  0x12   : > { %s1201_s27 = scalar_select %p1025_p6, 1, 0 }
  0x13   : > { %p1033_p8 = pnand %p586_p5, %p205_p7  ;;  %s946_s7 = smov [#allocation2]  }
  0x14   : > { %1202 = sst [smem:[#allocation19_spill]] %s1201_s27  ;;  %s221_s8 = sshll.u32 %s946_s7, 4  ;;  %s222_s8 = int_to_ptr.vmem [resolvable:$true] %s221_s8 }
  0x15   : > { %p623_p10 = pneg %p1033_p8  ;;  %s33_s10 = sadd.s32 1, %s940_s22 }
  0x16   : > { %p34_p12 = scmp.ge.s32.totalorder %s33_s10, 2  ;;  %s97_s11 = sadd.s32 1, %s932_s20 }
  0x17   : > { %s219_s30 = sshll.u32 %s1203_s0, 4  ;;  %p1042_p11 = pnand %p623_p10, %p111_p1  ;;  %s220_s30 = int_to_ptr.hbm [resolvable:$true] %s219_s30 }
  0x18   : > { %p104_p13 = scmp.ne.s32.totalorder %s932_s20, %s928_s19  ;;  %p105_p0 = scmp.eq.s32.totalorder %s944_s23, 0 }
  0x19   : > { %626 = dma.hbm_to_vmem [thread:$0]  (!%p1042_p11), %s220_s30, 128, %s222_s8, [#allocation3]  }
  0x1a   : > { %s1220_s10 = smov (%p34_p12, %s33_s10), 0  ;;  %p1055_p3 = por %p105_p0, %p104_p13 }
  0x1b   : > { %1206 = sst [smem:[#allocation20_spill]] %s1220_s10  ;;  %p1061_p5 = por %p164_p2, %p104_p13 }
  0x1c   : > { %s92_s14 = ssub.s32 %s940_s22, %s1220_s10  ;;  %p646_p7 = scmp.lt.s32.totalorder %s944_s23, 2 }
  0x1d   : > { %p95_p10 = scmp.eq.s32.totalorder %s92_s14, 0  ;;  %s246_s15 = sand.u32 1, %s944_s23  }
  0x1e   : > { %s248_s16 = sand.u32 1, %s932_s20   ;;  %s591_s28 = sshll.u32 %s940_s22, 3 }
  0x1f   : > { %s1071_s17 = scalar_select %p95_p10, %s932_s20, %s97_s11  }
  0x20   : > { %s590_s25 = sshll.u32 %s248_s16, 3  ;;  %s1210_s2 = sld [smem:[#allocation23_spill]] }
  0x21   : > { %1209 = sst [smem:[#allocation21_spill]] %s1071_s17  ;;  %s250_s0 = scalar_lea.vmem [#allocation7], %s590_s25 }
  0x22   : > { %s259_s27 = sshll.u32 %s250_s0, 4  ;;  %p1081_p2 = pnand %p646_p7, %p1055_p3  ;;  %s260_s27 = int_to_ptr.vmem [resolvable:$true] %s259_s27 }
  0x23   : > { %s233_s16 = sshll.u32 %s1187_s1, 4  ;;  %s947_s29 = smov [#allocation5]   ;;  %s234_s16 = int_to_ptr.hbm [resolvable:$true] %s233_s16 }
  0x24   : > { %s235_s30 = sshll.u32 %s947_s29, 4  ;;  %s270_s22 = scalar_lea.vmem [#allocation8], %s590_s25  ;;  %s236_s30 = int_to_ptr.vmem [resolvable:$true] %s235_s30 }
  0x25   : > { %629 = dma.hbm_to_vmem [thread:$0]  (!%p1042_p11), %s234_s16, 128, %s236_s30, [#allocation6]  }
  0x26   : > { %s255_s7 = scalar_lea.hbm %s1210_s2, %s591_s28  ;;  %s275_s2 = scalar_lea.hbm %s1189_s3, %s591_s28 }
  0x27   : > { %s257_s8 = sshll.u32 %s255_s7, 4  ;;  %s247_s7 = scalar_lea.sflag [#allocation3], %s246_s15  ;;  %s258_s8 = int_to_ptr.hbm [resolvable:$true] %s257_s8 }
  0x28   : > { %633 = dma.hbm_to_vmem [thread:$0]  (!%p1081_p2), %s258_s8, 128, %s260_s27, %s247_s7  }
  0x29   : > { %s279_s17 = sshll.u32 %s270_s22, 4  ;;  %s277_s20 = sshll.u32 %s275_s2, 4  ;;  %s280_s17 = int_to_ptr.vmem [resolvable:$true] %s279_s17  ;;  %s278_s20 = int_to_ptr.hbm [resolvable:$true] %s277_s20 }
  0x2a   : > { %636 = dma.hbm_to_vmem [thread:$0]  (!%p1081_p2), %s278_s20, 128, %s280_s17, %s247_s7  }
  0x2b   : > { %288 = sbr.rel (%p1033_p8) target bundleno = 199 (0xc7), region = 36 }
  0x30   : > { %903 = dma.done.wait (%p111_p1), [#allocation3], 128  }
  0x31   : > { %905 = vsyncadd (%p111_p1), [#allocation3], 4294967168 }
  0x32   : > { %907 = dma.done.wait (%p111_p1), [#allocation6], 128  }
  0x33   : > { %909 = vsyncadd (%p111_p1), [#allocation6], 4294967168  ;;  %s300_s2 = sand.u32 1, %s1011_s24   ;;  %s1109_s20 = sand.u32 1, %s928_s19  }
  0x34   : > { %s1112_s22 = sshll.u32 %s1109_s20, 3  ;;  %s301_s27 = scalar_lea.sflag [#allocation3], %s300_s2 }
  0x35   : > { %s304_s6 = scalar_lea.vmem [#allocation7], %s1112_s22 }
  0x36   : > { %911 = dma.done.wait (%p1020_p4), %s301_s27, 256  }
  0x37   : > { %913 = vsyncadd (%p1020_p4), %s301_s27, 4294967040  ;;  %s314_s9 = scalar_lea.vmem [#allocation8], %s1112_s22  ;;  %v369_v1 = vld [vmem:[%s304_s6] sm:$0xff]  ;;  %s948_s10 = smov 112   ;;  %v354_v2 = vlaneseq  ;;  %v352_v7 = vld [vmem:[#allocation2] sm:$0xff] }
  0x38   : > { %v379_v0 = vld [vmem:[%s314_s9] sm:$0xff]  ;;  %370 = vrot.lane.b32.xlu0 %v369_v1, %s948_s10  ;;  %s949_s24 = smov 16   ;;  %s603_s15 = sshll.u32 %s936_s21, 3  ;;  %v375_v10 = vmul.f32 %v369_v1, %v352_v7 }
  0x39   : > { %380 = vrot.lane.b32.xlu1 %v379_v0, %s948_s10  ;;  %v355_v3 = vand.u32 127, %v354_v2  ;;  %s406_s25 = scalar_lea.hbm %s1190_s4, %s603_s15  ;;  %v353_v8 = vld [vmem:[#allocation5] sm:$0xff]  ;;  %s421_s14 = scalar_lea.hbm %s1191_s5, %s603_s15  ;;  %v385_v9 = vmul.f32 %v379_v0, %v352_v7 }
  0x3a   : > { %s344_s11 = scalar_lea.vmem [#allocation9], %s1112_s22  ;;  %s410_s21 = sshll.u32 %s406_s25, 4  ;;  %s411_s21 = int_to_ptr.hbm [resolvable:$true] %s410_s21 }
  0x3b   : > { %v360_v6 = vand.u32 31, %v355_v3  ;;  %s1128_s16 = sshll.u32 %s344_s11, 4  ;;  %s351_s29 = scalar_lea.vmem [#allocation10], %s1112_s22  ;;  %s409_s16 = int_to_ptr.vmem [resolvable:$true] %s1128_s16 }
  0x3c   : > { %s1131_s30 = sshll.u32 %s351_s29, 4  ;;  %s425_s7 = sshll.u32 %s421_s14, 4  ;;  %s424_s30 = int_to_ptr.vmem [resolvable:$true] %s1131_s30  ;;  %s1135_s7 = int_to_ptr.hbm [resolvable:$true] %s425_s7 }
  0x3d   : > { %vm368_vm0 = vcmp.lt.s32.totalorder %v360_v6, 16  ;;  %s390_s0 = scalar_lea.sflag [#allocation4], %s1109_s20  ;;  %s836_s12 = sshra.s32 %s411_s21, 4  ;;  %s837_s12 = int_to_ptr.hbm [resolvable:$true] %s836_s12 }
  0x3e   : > { %s838_s2 = scalar_lea.hbm %s837_s12, 8  ;;  %s842_s6 = scalar_lea.hbm %s1190_s4, 16 }
  0x3f   : > { %p839_p1 = scmp.ne.s32.totalorder %s837_s12, %s838_s2  ;;  %p843_p11 = scmp.lt.s32.totalorder %s837_s12, %s1190_s4 }
  0x40   : > { %372 = vrot.lane.b32.xlu0 %v369_v1, %s949_s24  ;;  %p844_p12 = scmp.lt.s32.totalorder %s842_s6, %s838_s2 }
  0x41   : > { %382 = vrot.lane.b32.xlu1 %v379_v0, %s949_s24  ;;  %p840_p4 = pnand %p839_p1, %p1061_p5 }
  0x42   : > { %p845_p13 = por %p844_p12, %p843_p11 }
  0x43   : > { %p841_p8 = pneg %p840_p4 }
  0x45   : > { %p846_p0 = pnand %p845_p13, %p841_p8 }
  0xaa   : > { %v371_v5 = vpop.permute.xlu0 %370 }
  0xab   : > { %v381_v4 = vpop.permute.xlu1 %380 }
  0xb2   : > { %v373_v12 = vpop.permute.xlu0 %372 }
  0xb3   : > { %v383_v11 = vpop.permute.xlu1 %382  ;;  %v374_v14 = vsel %vm368_vm0, %v371_v5, %v373_v12 }
  0xb4   : > { %v384_v13 = vsel %vm368_vm0, %v381_v4, %v383_v11  ;;  %v376_v16 = vmul.f32 %v374_v14, %v353_v8 }
  0xb5   : > { %v386_v15 = vmul.f32 %v384_v13, %v353_v8 }
  0xb6   : > { %v377_v18 = vadd.f32 %v376_v16, %v375_v10 }
  0xb7   : > { %v387_v17 = vadd.f32 %v386_v15, %v385_v9 }
  0xb8   : > { %378 = vst [vmem:[%s344_s11] sm:$0xff] %v377_v18 }
  0xb9   : > { %849 = shalt.err (!%p846_p0)
}
  0xba   : > { %619 = dma.vmem_to_hbm [thread:$0]  (%p1061_p5), %s409_s16, 128, %s411_s21, %s390_s0   ;;  %388 = vst [vmem:[%s351_s29] sm:$0xff] %v387_v17 }
  0xbb   : > { %s395_s24 = scalar_lea.sflag [#allocation11], %s1109_s20  ;;  %s864_s15 = sshra.s32 %s1135_s7, 4  ;;  %s865_s15 = int_to_ptr.hbm [resolvable:$true] %s864_s15 }
  0xbc   : > { %s866_s26 = scalar_lea.hbm %s865_s15, 8  ;;  %s870_s28 = scalar_lea.hbm %s1191_s5, 16 }
  0xbd   : > { %p867_p3 = scmp.ne.s32.totalorder %s865_s15, %s866_s26  ;;  %p871_p2 = scmp.lt.s32.totalorder %s865_s15, %s1191_s5 }
  0xbe   : > { %p872_p1 = scmp.lt.s32.totalorder %s870_s28, %s866_s26 }
  0xbf   : > { %p868_p7 = pnand %p867_p3, %p1061_p5 }
  0xc0   : > { %p873_p4 = por %p872_p1, %p871_p2 }
  0xc1   : > { %p869_p10 = pneg %p868_p7 }
  0xc3   : > { %p874_p8 = pnand %p873_p4, %p869_p10 }
  0xc5   : > { %877 = shalt.err (!%p874_p8)
}
  0xc6   : > { %620 = dma.vmem_to_hbm [thread:$0]  (%p1061_p5), %s424_s30, 128, %s1135_s7, %s395_s24  }
  0xc7 PF: > { %s437_s11 = sand.u32 1, %s924_s18   ;;  %p638_p11 = pnand %p589_p9, %p1025_p6 }
  0xc8   : > { %s438_s16 = scalar_lea.sflag [#allocation4], %s437_s11 }
  0xc9   : > { %p639_p12 = pneg %p638_p11 }
  0xcb   : > { %915 = dma.done.wait (%p639_p12), %s438_s16, 128  }
  0xcc   : > { %917 = vsyncadd (%p639_p12), %s438_s16, 4294967168  ;;  %s448_s21 = scalar_lea.sflag [#allocation11], %s437_s11 }
  0xcd   : > { %919 = dma.done.wait (%p639_p12), %s448_s21, 128  }
  0xce   : > { %921 = vsyncadd (%p639_p12), %s448_s21, 4294967168  ;;  %s24_s23 = sadd.s32 1, %s944_s23   ;;  %s1213_s13 = sld [smem:[#allocation17_spill]] }
  0xcf   : > { %p21_p13 = scmp.ge.s32.totalorder %s24_s23, 4   ;;  %s1214_s20 = sld [smem:[#allocation21_spill]] }
  0xd0   : > { %s1215_s21 = sld [smem:[#allocation18_spill]]  ;;  %s1217_s18 = smov %s928_s19 }
  0xd1   : > { %s1216_s22 = sld [smem:[#allocation20_spill]]  ;;  %23 = sbr.rel (!%p21_p13) target bundleno = 11 (0xb), region = 118 }
  0xd4   : > { %s1218_s19 = smov %s1213_s13 }
  0xd6   :  { %454 = vsyncpa [#allocation3], 1 }
  0xd7   :  { %456 = vsyncpa [#allocation3 + $0x1], 1 }
  0xd8   :  { %457 = vsyncpa [#allocation6], 1 }
  0xd9   :  { %458 = vsyncpa [#allocation4], 1 }
  0xda   :  { %460 = vsyncpa [#allocation4 + $0x1], 1 }
  0xdb   :  { %461 = vsyncpa [#allocation11], 1 }
  0xdc   :  { %463 = vsyncpa [#allocation11 + $0x1], 1 }

</bundles_post_ra>
